<compile_context>
chip_gen: v7x
topology: tpu7x:2x2x1
jax: 0.10.0
libtpu: 0.0.40
codegen_flags: <defaults>
</compile_context>

<pallas_src>
import jax
import jax.numpy as jnp
from jax.experimental import pallas as pl
from jax.experimental.pallas import tpu as pltpu


_LANES = 128
_GRAN = 1024            # 8 sublanes * 128 lanes: smallest dense (8, 128) unit
_MAX_TILE_N = 262144    # 256K samples/tile -> 3 MiB/buffer, 12 MiB double-buffered
_TARGET_STEPS = 4       # keep >= 4 grid steps when possible (v7x megacore)


def _cdiv(a, b):
    return (a + b - 1) // b


def _round_up(a, b):
    return _cdiv(a, b) * b


def _choose_tile(n):
    """Batch tile (samples): multiple of 1024, amortizes per-step overhead,
    fits VMEM on all generations, minimizes padding, keeps >=4 steps if it can."""
    n_units = _cdiv(n, _GRAN)
    steps = max(_cdiv(n_units, _MAX_TILE_N // _GRAN),
                min(_TARGET_STEPS, n_units))
    tn = _round_up(_cdiv(n_units * _GRAN, steps), _GRAN)
    n_pad = _round_up(n, tn)
    return tn, n_pad


def _net_kernel(wc_ref, bc_ref, wl_ref, bl_ref, x_ref, o_ref):
    # x_ref / o_ref: (3, TNr, 128) channels-first, sublane+lane dense f32 tiles.
    # wc_ref / wl_ref: (9,) flat row-major (out_ch, in_ch) weights in SMEM.
    # bc_ref / bl_ref: (3,) biases in SMEM (resident, no per-step DMA).
    x0 = x_ref[0]          # dense (TNr, 128) slabs
    x1 = x_ref[1]
    x2 = x_ref[2]

    # Layer 1: 1x1 conv == per-output-channel broadcast FMA on the VPU + ReLU.
    h = []
    for c in range(3):
        acc = (wc_ref[3 * c + 0] * x0
               + wc_ref[3 * c + 1] * x1
               + wc_ref[3 * c + 2] * x2
               + bc_ref[c])
        h.append(jnp.maximum(acc, 0.0))

    # Layer 2: Linear(3 -> 3), same structure; store each output channel plane
    # directly (no concatenate, no cross-sublane shuffle).
    for c in range(3):
        o_ref[c] = (wl_ref[3 * c + 0] * h[0]
                    + wl_ref[3 * c + 1] * h[1]
                    + wl_ref[3 * c + 2] * h[2]
                    + bl_ref[c]).astype(o_ref.dtype)


def _forward_impl(x_nchw, wc, bc, wl, bl):
    N, C, H, W = x_nchw.shape
    assert C * H * W == 3, "Linear(3,3) after flatten requires 3*H*W == 3"
    tn, n_pad = _choose_tile(N)
    tnr = tn // _LANES
    nb = n_pad // _LANES

    # Layout plumbing (one fused XLA copy under jit): NCHW (1x1 spatial)
    # -> channels-first (3, N) -> zero-pad -> dense (3, Nb, 128) slabs.
    x_cn = x_nchw.reshape(N, 3).astype(jnp.float32).T
    x_cn = jnp.pad(x_cn, ((0, 0), (0, n_pad - N)))
    x_blk = x_cn.reshape(3, nb, _LANES)

    smem = pl.BlockSpec(memory_space=pltpu.MemorySpace.SMEM)
    out_blk = pl.pallas_call(
        _net_kernel,
        out_shape=jax.ShapeDtypeStruct((3, nb, _LANES), jnp.float32),
        grid=(nb // tnr,),
        in_specs=[smem, smem, smem, smem,
                  pl.BlockSpec((3, tnr, _LANES), lambda i: (0, i, 0))],
        out_specs=pl.BlockSpec((3, tnr, _LANES), lambda i: (0, i, 0)),
        compiler_params=pltpu.CompilerParams(
            dimension_semantics=("parallel",),
            vmem_limit_bytes=32 * 1024 * 1024,
        ),
    )(
        wc.reshape(9).astype(jnp.float32),
        bc.astype(jnp.float32),
        wl.reshape(9).astype(jnp.float32),
        bl.astype(jnp.float32),
        x_blk,
    )

    # Back to PyTorch output layout (N, 3) (one fused copy under jit).
    return out_blk.reshape(3, n_pad)[:, :N].T


forward = jax.jit(_forward_impl)


def forward_ref(x_nchw, wc, bc, wl, bl):
    """Pure-JAX reference of the PyTorch forward, for correctness checks."""
    N = x_nchw.shape[0]
    x2d = x_nchw.reshape(N, 3)
    h = jnp.maximum(x2d @ wc.T + bc, 0.0)
    return h @ wl.T + bl


if __name__ == "__main__":
    key = jax.random.PRNGKey(0)
    kx, kp = jax.random.split(key)
    k1, k2, k3, k4 = jax.random.split(kp, 4)
    bound = 1.0 / jnp.sqrt(3.0)
    wc = jax.random.uniform(k1, (3, 3), jnp.float32, -bound, bound)  # conv weight (O, I)
    bc = jax.random.uniform(k2, (3,), jnp.float32, -bound, bound)    # conv bias
    wl = jax.random.uniform(k3, (3, 3), jnp.float32, -bound, bound)  # linear weight (O, I)
    bl = jax.random.uniform(k4, (3,), jnp.float32, -bound, bound)    # linear bias

    # Small example consistent with the module: batch=2, channels=3, 1x1 spatial
    # (Linear(in_features=3) after Flatten forces H = W = 1).
    x = jax.random.normal(kx, (2, 3, 1, 1), dtype=jnp.float32)
    out = jax.block_until_ready(forward(x, wc, bc, wl, bl))
    ref = forward_ref(x, wc, bc, wl, bl)
    assert out.shape == (2, 3)
    assert jnp.allclose(out, ref, atol=1e-5, rtol=1e-5)

    # Larger batches: exercise padding minimization, tile selection and a
    # multi-step grid (sharded across TensorCores on v7x).
    for n in (2500, 50000):
        xb = jax.random.normal(jax.random.PRNGKey(n), (n, 3, 1, 1), dtype=jnp.float32)
        ob = jax.block_until_ready(forward(xb, wc, bc, wl, bl))
        rb = forward_ref(xb, wc, bc, wl, bl)
        assert ob.shape == (n, 3)
        assert jnp.allclose(ob, rb, atol=1e-5, rtol=1e-5)

    print("KERNEL_OK")
</pallas_src>

<mosaic_0001>
module attributes {stable_mosaic.version = 11 : i64} {
  func.func @_net_kernel(%arg0: i32, %arg1: memref<9xf32, #tpu.memory_space<smem>>, %arg2: memref<3xf32, #tpu.memory_space<smem>>, %arg3: memref<9xf32, #tpu.memory_space<smem>>, %arg4: memref<3xf32, #tpu.memory_space<smem>>, %arg5: memref<3x8x128xf32, #tpu.memory_space<vmem>>, %arg6: memref<3x8x128xf32, #tpu.memory_space<vmem>>) attributes {dimension_semantics = [#tpu.dimension_semantics<parallel>], iteration_bounds = array<i64: 1>, scalar_prefetch = 0 : i64, scratch_operands = 0 : i64, tpu.core_type = #tpu.core_type<tc>, window_params = [{transform_indices = @transform_0, window_bounds = array<i64: 9>}, {transform_indices = @transform_1, window_bounds = array<i64: 3>}, {transform_indices = @transform_2, window_bounds = array<i64: 9>}, {transform_indices = @transform_3, window_bounds = array<i64: 3>}, {transform_indices = @transform_4, window_bounds = array<i64: 3, 8, 128>}, {transform_indices = @transform_5, window_bounds = array<i64: 3, 8, 128>}]} {
    %c0 = arith.constant 0 : index
    %c0_0 = arith.constant 0 : index
    %c0_1 = arith.constant 0 : index
    %0 = vector.load %arg5[%c0, %c0_0, %c0_1] : memref<3x8x128xf32, #tpu.memory_space<vmem>>, vector<1x8x128xf32>
    %1 = vector.shape_cast %0 : vector<1x8x128xf32> to vector<8x128xf32>
    %c1 = arith.constant 1 : index
    %c0_2 = arith.constant 0 : index
    %c0_3 = arith.constant 0 : index
    %2 = vector.load %arg5[%c1, %c0_2, %c0_3] : memref<3x8x128xf32, #tpu.memory_space<vmem>>, vector<1x8x128xf32>
    %3 = vector.shape_cast %2 : vector<1x8x128xf32> to vector<8x128xf32>
    %c2 = arith.constant 2 : index
    %c0_4 = arith.constant 0 : index
    %c0_5 = arith.constant 0 : index
    %4 = vector.load %arg5[%c2, %c0_4, %c0_5] : memref<3x8x128xf32, #tpu.memory_space<vmem>>, vector<1x8x128xf32>
    %5 = vector.shape_cast %4 : vector<1x8x128xf32> to vector<8x128xf32>
    %c0_6 = arith.constant 0 : index
    %6 = memref.load %arg1[%c0_6] : memref<9xf32, #tpu.memory_space<smem>>
    %7 = vector.broadcast %6 : f32 to vector<8x128xf32>
    %8 = arith.mulf %7, %1 : vector<8x128xf32>
    %c1_7 = arith.constant 1 : index
    %9 = memref.load %arg1[%c1_7] : memref<9xf32, #tpu.memory_space<smem>>
    %10 = vector.broadcast %9 : f32 to vector<8x128xf32>
    %11 = arith.mulf %10, %3 : vector<8x128xf32>
    %12 = arith.addf %8, %11 : vector<8x128xf32>
    %c2_8 = arith.constant 2 : index
    %13 = memref.load %arg1[%c2_8] : memref<9xf32, #tpu.memory_space<smem>>
    %14 = vector.broadcast %13 : f32 to vector<8x128xf32>
    %15 = arith.mulf %14, %5 : vector<8x128xf32>
    %16 = arith.addf %12, %15 : vector<8x128xf32>
    %c0_9 = arith.constant 0 : index
    %17 = memref.load %arg2[%c0_9] : memref<3xf32, #tpu.memory_space<smem>>
    %18 = vector.broadcast %17 : f32 to vector<8x128xf32>
    %19 = arith.addf %16, %18 : vector<8x128xf32>
    %cst = arith.constant 0.000000e+00 : f32
    %20 = vector.broadcast %cst : f32 to vector<8x128xf32>
    %21 = arith.maximumf %19, %20 : vector<8x128xf32>
    %c3 = arith.constant 3 : index
    %22 = memref.load %arg1[%c3] : memref<9xf32, #tpu.memory_space<smem>>
    %23 = vector.broadcast %22 : f32 to vector<8x128xf32>
    %24 = arith.mulf %23, %1 : vector<8x128xf32>
    %c4 = arith.constant 4 : index
    %25 = memref.load %arg1[%c4] : memref<9xf32, #tpu.memory_space<smem>>
    %26 = vector.broadcast %25 : f32 to vector<8x128xf32>
    %27 = arith.mulf %26, %3 : vector<8x128xf32>
    %28 = arith.addf %24, %27 : vector<8x128xf32>
    %c5 = arith.constant 5 : index
    %29 = memref.load %arg1[%c5] : memref<9xf32, #tpu.memory_space<smem>>
    %30 = vector.broadcast %29 : f32 to vector<8x128xf32>
    %31 = arith.mulf %30, %5 : vector<8x128xf32>
    %32 = arith.addf %28, %31 : vector<8x128xf32>
    %c1_10 = arith.constant 1 : index
    %33 = memref.load %arg2[%c1_10] : memref<3xf32, #tpu.memory_space<smem>>
    %34 = vector.broadcast %33 : f32 to vector<8x128xf32>
    %35 = arith.addf %32, %34 : vector<8x128xf32>
    %cst_11 = arith.constant 0.000000e+00 : f32
    %36 = vector.broadcast %cst_11 : f32 to vector<8x128xf32>
    %37 = arith.maximumf %35, %36 : vector<8x128xf32>
    %c6 = arith.constant 6 : index
    %38 = memref.load %arg1[%c6] : memref<9xf32, #tpu.memory_space<smem>>
    %39 = vector.broadcast %38 : f32 to vector<8x128xf32>
    %40 = arith.mulf %39, %1 : vector<8x128xf32>
    %c7 = arith.constant 7 : index
    %41 = memref.load %arg1[%c7] : memref<9xf32, #tpu.memory_space<smem>>
    %42 = vector.broadcast %41 : f32 to vector<8x128xf32>
    %43 = arith.mulf %42, %3 : vector<8x128xf32>
    %44 = arith.addf %40, %43 : vector<8x128xf32>
    %c8 = arith.constant 8 : index
    %45 = memref.load %arg1[%c8] : memref<9xf32, #tpu.memory_space<smem>>
    %46 = vector.broadcast %45 : f32 to vector<8x128xf32>
    %47 = arith.mulf %46, %5 : vector<8x128xf32>
    %48 = arith.addf %44, %47 : vector<8x128xf32>
    %c2_12 = arith.constant 2 : index
    %49 = memref.load %arg2[%c2_12] : memref<3xf32, #tpu.memory_space<smem>>
    %50 = vector.broadcast %49 : f32 to vector<8x128xf32>
    %51 = arith.addf %48, %50 : vector<8x128xf32>
    %cst_13 = arith.constant 0.000000e+00 : f32
    %52 = vector.broadcast %cst_13 : f32 to vector<8x128xf32>
    %53 = arith.maximumf %51, %52 : vector<8x128xf32>
    %c0_14 = arith.constant 0 : index
    %54 = memref.load %arg3[%c0_14] : memref<9xf32, #tpu.memory_space<smem>>
    %55 = vector.broadcast %54 : f32 to vector<8x128xf32>
    %56 = arith.mulf %55, %21 : vector<8x128xf32>
    %c1_15 = arith.constant 1 : index
    %57 = memref.load %arg3[%c1_15] : memref<9xf32, #tpu.memory_space<smem>>
    %58 = vector.broadcast %57 : f32 to vector<8x128xf32>
    %59 = arith.mulf %58, %37 : vector<8x128xf32>
    %60 = arith.addf %56, %59 : vector<8x128xf32>
    %c2_16 = arith.constant 2 : index
    %61 = memref.load %arg3[%c2_16] : memref<9xf32, #tpu.memory_space<smem>>
    %62 = vector.broadcast %61 : f32 to vector<8x128xf32>
    %63 = arith.mulf %62, %53 : vector<8x128xf32>
    %64 = arith.addf %60, %63 : vector<8x128xf32>
    %c0_17 = arith.constant 0 : index
    %65 = memref.load %arg4[%c0_17] : memref<3xf32, #tpu.memory_space<smem>>
    %66 = vector.broadcast %65 : f32 to vector<8x128xf32>
    %67 = arith.addf %64, %66 : vector<8x128xf32>
    %c0_18 = arith.constant 0 : index
    %c0_19 = arith.constant 0 : index
    %c0_20 = arith.constant 0 : index
    %68 = vector.load %arg6[%c0_18, %c0_19, %c0_20] : memref<3x8x128xf32, #tpu.memory_space<vmem>>, vector<1x8x128xf32>
    %69 = vector.shape_cast %68 : vector<1x8x128xf32> to vector<8x128xf32>
    %70 = vector.shape_cast %67 : vector<8x128xf32> to vector<1x8x128xf32>
    tpu.vector_store %arg6[%c0_18, %c0_19, %c0_20], %70 {strides = array<i32>} : memref<3x8x128xf32, #tpu.memory_space<vmem>>, vector<1x8x128xf32>,
    %c3_21 = arith.constant 3 : index
    %71 = memref.load %arg3[%c3_21] : memref<9xf32, #tpu.memory_space<smem>>
    %72 = vector.broadcast %71 : f32 to vector<8x128xf32>
    %73 = arith.mulf %72, %21 : vector<8x128xf32>
    %c4_22 = arith.constant 4 : index
    %74 = memref.load %arg3[%c4_22] : memref<9xf32, #tpu.memory_space<smem>>
    %75 = vector.broadcast %74 : f32 to vector<8x128xf32>
    %76 = arith.mulf %75, %37 : vector<8x128xf32>
    %77 = arith.addf %73, %76 : vector<8x128xf32>
    %c5_23 = arith.constant 5 : index
    %78 = memref.load %arg3[%c5_23] : memref<9xf32, #tpu.memory_space<smem>>
    %79 = vector.broadcast %78 : f32 to vector<8x128xf32>
    %80 = arith.mulf %79, %53 : vector<8x128xf32>
    %81 = arith.addf %77, %80 : vector<8x128xf32>
    %c1_24 = arith.constant 1 : index
    %82 = memref.load %arg4[%c1_24] : memref<3xf32, #tpu.memory_space<smem>>
    %83 = vector.broadcast %82 : f32 to vector<8x128xf32>
    %84 = arith.addf %81, %83 : vector<8x128xf32>
    %c1_25 = arith.constant 1 : index
    %c0_26 = arith.constant 0 : index
    %c0_27 = arith.constant 0 : index
    %85 = vector.load %arg6[%c1_25, %c0_26, %c0_27] : memref<3x8x128xf32, #tpu.memory_space<vmem>>, vector<1x8x128xf32>
    %86 = vector.shape_cast %85 : vector<1x8x128xf32> to vector<8x128xf32>
    %87 = vector.shape_cast %84 : vector<8x128xf32> to vector<1x8x128xf32>
    tpu.vector_store %arg6[%c1_25, %c0_26, %c0_27], %87 {strides = array<i32>} : memref<3x8x128xf32, #tpu.memory_space<vmem>>, vector<1x8x128xf32>,
    %c6_28 = arith.constant 6 : index
    %88 = memref.load %arg3[%c6_28] : memref<9xf32, #tpu.memory_space<smem>>
    %89 = vector.broadcast %88 : f32 to vector<8x128xf32>
    %90 = arith.mulf %89, %21 : vector<8x128xf32>
    %c7_29 = arith.constant 7 : index
    %91 = memref.load %arg3[%c7_29] : memref<9xf32, #tpu.memory_space<smem>>
    %92 = vector.broadcast %91 : f32 to vector<8x128xf32>
    %93 = arith.mulf %92, %37 : vector<8x128xf32>
    %94 = arith.addf %90, %93 : vector<8x128xf32>
    %c8_30 = arith.constant 8 : index
    %95 = memref.load %arg3[%c8_30] : memref<9xf32, #tpu.memory_space<smem>>
    %96 = vector.broadcast %95 : f32 to vector<8x128xf32>
    %97 = arith.mulf %96, %53 : vector<8x128xf32>
    %98 = arith.addf %94, %97 : vector<8x128xf32>
    %c2_31 = arith.constant 2 : index
    %99 = memref.load %arg4[%c2_31] : memref<3xf32, #tpu.memory_space<smem>>
    %100 = vector.broadcast %99 : f32 to vector<8x128xf32>
    %101 = arith.addf %98, %100 : vector<8x128xf32>
    %c2_32 = arith.constant 2 : index
    %c0_33 = arith.constant 0 : index
    %c0_34 = arith.constant 0 : index
    %102 = vector.load %arg6[%c2_32, %c0_33, %c0_34] : memref<3x8x128xf32, #tpu.memory_space<vmem>>, vector<1x8x128xf32>
    %103 = vector.shape_cast %102 : vector<1x8x128xf32> to vector<8x128xf32>
    %104 = vector.shape_cast %101 : vector<8x128xf32> to vector<1x8x128xf32>
    tpu.vector_store %arg6[%c2_32, %c0_33, %c0_34], %104 {strides = array<i32>} : memref<3x8x128xf32, #tpu.memory_space<vmem>>, vector<1x8x128xf32>,
    return
  }
  func.func @transform_0(%arg0: i32) -> i32 {
    %c0_i32 = arith.constant 0 : i32
    %c0_i32_0 = arith.constant 0 : i32
    return %c0_i32 : i32
  }
  func.func @transform_1(%arg0: i32) -> i32 {
    %c0_i32 = arith.constant 0 : i32
    %c0_i32_0 = arith.constant 0 : i32
    return %c0_i32 : i32
  }
  func.func @transform_2(%arg0: i32) -> i32 {
    %c0_i32 = arith.constant 0 : i32
    %c0_i32_0 = arith.constant 0 : i32
    return %c0_i32 : i32
  }
  func.func @transform_3(%arg0: i32) -> i32 {
    %c0_i32 = arith.constant 0 : i32
    %c0_i32_0 = arith.constant 0 : i32
    return %c0_i32 : i32
  }
  func.func @transform_4(%arg0: i32) -> (i32, i32, i32) {
    %c0_i32 = arith.constant 0 : i32
    %c0_i32_0 = arith.constant 0 : i32
    %c0_i32_1 = arith.constant 0 : i32
    return %c0_i32, %arg0, %c0_i32_0 : i32, i32, i32
  }
  func.func @transform_5(%arg0: i32) -> (i32, i32, i32) {
    %c0_i32 = arith.constant 0 : i32
    %c0_i32_0 = arith.constant 0 : i32
    %c0_i32_1 = arith.constant 0 : i32
    return %c0_i32, %arg0, %c0_i32_0 : i32, i32, i32
  }
}

</mosaic_0001>

<bundles_post_ra>
// kernel: _forward_impl.1
= control target key start
LH: loop header
LB: loop body
LE: loop exit
PB: predicated region body
PF: predicated region fallthrough
CT: control target
= control target key end

     0   :  { %10 = vsyncpa [#allocation3], 0  ;;  %s372_s0 = inlined_call_operand.vmem [shape: f32[9], index: 0, kind: input, shape index: {}]   ;;  %s373_s1 = inlined_call_operand.vmem [shape: f32[3], index: 1, kind: input, shape index: {}]   ;;  %s374_s2 = inlined_call_operand.vmem [shape: f32[9], index: 2, kind: input, shape index: {}]   ;;  %s375_s3 = inlined_call_operand.vmem [shape: f32[3], index: 3, kind: input, shape index: {}]   ;;  %s376_s4 = inlined_call_operand.vmem [shape: f32[3,8,128], index: 4, kind: input, shape index: {}]   ;;  %s377_s5 = inlined_call_operand.vmem [shape: f32[3,8,128], index: 5, kind: output, shape index: {}]  }
   0x1   :  { %11 = vsyncpa [#allocation5], 0  ;;  %s29_s20 = sshll.u32 %s373_s1, 4  ;;  %s30_s20 = int_to_ptr.vmem [resolvable:$true] %s29_s20 }
   0x2   :  { %12 = vsyncpa [#allocation8], 0  ;;  %s19_s23 = sshll.u32 %s372_s0, 4  ;;  %s200_s24 = scalar_lea.vmem %s30_s20, 16  ;;  %s20_s23 = int_to_ptr.vmem [resolvable:$true] %s19_s23 }
   0x3   :  { %p201_p0 = scmp.ne.s32.totalorder %s30_s20, %s200_s24  ;;  %p205_p1 = scmp.lt.s32.totalorder %s30_s20, %s30_s20 }
   0x4   :  { %p206_p2 = scmp.lt.s32.totalorder %s200_s24, %s200_s24 }
   0x6   :  { %p207_p3 = por %p206_p2, %p205_p1 }
   0x8   :  { %p208_p4 = pnand %p207_p3, %p201_p0 }
   0xa   :  { %211 = shalt.err (!%p208_p4)
}
   0xb   :  { %s254_s25 = smov [#allocation4]   ;;  %s212_s26 = scalar_lea.vmem %s20_s23, 16 }
   0xc   :  { %32 = dma.vmem_to_smem %s30_s20, 16, %s254_s25, [#allocation5]  }
   0xd   :  { %p213_p5 = scmp.ne.s32.totalorder %s20_s23, %s212_s26  ;;  %p217_p6 = scmp.lt.s32.totalorder %s20_s23, %s20_s23 }
   0xe   :  { %p218_p7 = scmp.lt.s32.totalorder %s212_s26, %s212_s26 }
  0x10   :  { %p219_p8 = por %p218_p7, %p217_p6 }
  0x12   :  { %p220_p9 = pnand %p219_p8, %p213_p5 }
  0x14   :  { %223 = shalt.err (!%p220_p9)
}
  0x15   :  { %s255_s1 = smov [#allocation2]   ;;  %s39_s28 = sshll.u32 %s374_s2, 4  ;;  %s40_s28 = int_to_ptr.vmem [resolvable:$true] %s39_s28 }
  0x16   :  { %22 = dma.vmem_to_smem %s20_s23, 16, %s255_s1, [#allocation3]  }
  0x17   :  { %s49_s6 = sshll.u32 %s375_s3, 4  ;;  %s224_s7 = scalar_lea.vmem %s40_s28, 16  ;;  %s50_s6 = int_to_ptr.vmem [resolvable:$true] %s49_s6 }
  0x18   :  { %p225_p10 = scmp.ne.s32.totalorder %s40_s28, %s224_s7  ;;  %p229_p11 = scmp.lt.s32.totalorder %s40_s28, %s40_s28 }
  0x19   :  { %p230_p12 = scmp.lt.s32.totalorder %s224_s7, %s224_s7 }
  0x1b   :  { %p231_p13 = por %p230_p12, %p229_p11 }
  0x1d   :  { %p232_p0 = pnand %p231_p13, %p225_p10 }
  0x1f   :  { %235 = shalt.err (!%p232_p0)
}
  0x20   :  { %s256_s8 = smov [#allocation6]   ;;  %s236_s9 = scalar_lea.vmem %s50_s6, 16 }
  0x21   :  { %42 = dma.vmem_to_smem %s40_s28, 16, %s256_s8, [#allocation5]  }
  0x22   :  { %p237_p1 = scmp.ne.s32.totalorder %s50_s6, %s236_s9  ;;  %p241_p2 = scmp.lt.s32.totalorder %s50_s6, %s50_s6 }
  0x23   :  { %p242_p3 = scmp.lt.s32.totalorder %s236_s9, %s236_s9 }
  0x25   :  { %p243_p4 = por %p242_p3, %p241_p2 }
  0x27   :  { %p244_p5 = pnand %p243_p4, %p237_p1 }
  0x29   :  { %247 = shalt.err (!%p244_p5)
}
  0x2a   :  { %s257_s2 = smov [#allocation7]  }
  0x2b   :  { %52 = dma.vmem_to_smem %s50_s6, 16, %s257_s2, [#allocation8]  }
  0x2c   :  { %248 = dma.done.wait [#allocation3], 16  }
  0x2d   :  { %249 = vsyncadd [#allocation3], 4294967280 }
  0x2e   :  { %250 = dma.done.wait [#allocation5], 32  }
  0x2f   :  { %251 = vsyncadd [#allocation5], 4294967264 }
  0x30   :  { %252 = dma.done.wait [#allocation8], 16  }
  0x31   :  { %253 = vsyncadd [#allocation8], 4294967280 }
  0x32   :  { %67 = sfence }
  0x33   :  { %s73_s3 = sld [smem:[#allocation2]]  ;;  %s174_s10 = sld [smem:[#allocation2 + $0x1]]  ;;  %v68_v0 = vld [vmem:[%s376_s4] sm:$0xff]  ;;  %v172_v1 = vld [vmem:[%s376_s4 + $0x8] sm:$0xff]  ;;  %v173_v2 = vld [vmem:[%s376_s4 + $0x10] sm:$0xff] }
  0x34   :  { %s175_s11 = sld [smem:[#allocation2 + $0x2]]  ;;  %s300_s12 = sld [smem:[#allocation4]] }
  0x35   :  { %s176_s13 = sld [smem:[#allocation2 + $0x3]]  ;;  %s177_s14 = sld [smem:[#allocation2 + $0x4]] }
  0x36   :  { %s178_s15 = sld [smem:[#allocation2 + $0x5]]  ;;  %s305_s18 = sld [smem:[#allocation4 + $0x1]] }
  0x37   :  { %s307_s19 = sld [smem:[#allocation2 + $0x6]]  ;;  %s315_s24 = sld [smem:[#allocation2 + $0x7]] }
  0x38   :  { %s317_s25 = sld [smem:[#allocation2 + $0x8]]  ;;  %s319_s26 = sld [smem:[#allocation4 + $0x2]] }
  0x39   :  { %v74_v3 = vstv %s73_s3  ;;  %v77_v5 = vstv %s174_s10  ;;  %s321_s1 = sld [smem:[#allocation6]]  ;;  %s323_s4 = sld [smem:[#allocation6 + $0x1]] }
  0x3a   :  { %v75_v4 = vmul.f32 %v74_v3, %v68_v0  ;;  %v81_v6 = vstv %s175_s11  ;;  %v78_v7 = vmul.f32 %v172_v1, %v77_v5  ;;  %s325_s0 = sld [smem:[#allocation6 + $0x3]]  ;;  %s327_s27 = sld [smem:[#allocation6 + $0x2]]  ;;  %v85_v16 = vstv %s300_s12 }
  0x3b   :  { %v82_v8 = vmul.f32 %v173_v2, %v81_v6  ;;  %v89_v9 = vstv %s176_s13  ;;  %v92_v11 = vstv %s177_s14  ;;  %s329_s28 = sld [smem:[#allocation6 + $0x4]]  ;;  %s331_s29 = sld [smem:[#allocation6 + $0x5]] }
  0x3c   :  { %v90_v10 = vmul.f32 %v89_v9, %v68_v0  ;;  %v96_v12 = vstv %s178_s15  ;;  %v79_v13 = vadd.f32 %v78_v7, %v75_v4  ;;  %v93_v14 = vmul.f32 %v172_v1, %v92_v11  ;;  %s333_s30 = sld [smem:[#allocation6 + $0x6]]  ;;  %s339_s6 = sld [smem:[#allocation6 + $0x7]] }
  0x3d   :  { %v97_v15 = vmul.f32 %v173_v2, %v96_v12  ;;  %v104_v17 = vstv %s307_s19  ;;  %v107_v18 = vstv %s315_s24  ;;  %s341_s7 = sld [smem:[#allocation6 + $0x8]]  ;;  %v100_v24 = vstv %s305_s18  ;;  %s349_s9 = sld [smem:[#allocation7 + $0x1]] }
  0x3e   :  { %v111_v19 = vstv %s317_s25  ;;  %v83_v20 = vadd.f32 %v82_v8, %v79_v13  ;;  %v94_v21 = vadd.f32 %v93_v14, %v90_v10  ;;  %v105_v22 = vmul.f32 %v104_v17, %v68_v0  ;;  %s346_s8 = sld [smem:[#allocation7]]  ;;  %s351_s2 = sld [smem:[#allocation7 + $0x2]] }
  0x3f   :  { %v108_v23 = vmul.f32 %v172_v1, %v107_v18  ;;  %v112_v25 = vmul.f32 %v173_v2, %v111_v19  ;;  %v115_v29 = vstv %s319_s26  ;;  %v119_v30 = vstv %s321_s1 }
  0x40   :  { %v86_v26 = vadd.f32 %v85_v16, %v83_v20  ;;  %v98_v27 = vadd.f32 %v97_v15, %v94_v21  ;;  %v134_v31 = vstv %s325_s0  ;;  %v122_v35 = vstv %s323_s4 }
  0x41   :  { %v109_v28 = vadd.f32 %v108_v23, %v105_v22  ;;  %v137_v36 = vstv %s329_s28  ;;  %v126_v43 = vstv %s327_s27  ;;  %v141_v44 = vstv %s331_s29 }
  0x42   :  { %v87_v32 = vmax.f32 %v86_v26, 0.0  ;;  %v101_v33 = vadd.f32 %v100_v24, %v98_v27  ;;  %v150_v37 = vstv %s333_s30  ;;  %v153_v38 = vstv %s339_s6 }
  0x43   :  { %v113_v34 = vadd.f32 %v112_v25, %v109_v28  ;;  %v157_v46 = vstv %s341_s7  ;;  %v145_v56 = vstv %s349_s9 }
  0x44   :  { %v102_v39 = vmax.f32 %v101_v33, 0.0  ;;  %v120_v41 = vmul.f32 %v119_v30, %v87_v32  ;;  %v135_v42 = vmul.f32 %v134_v31, %v87_v32  ;;  %v151_v45 = vmul.f32 %v150_v37, %v87_v32 }
  0x45   :  { %v116_v40 = vadd.f32 %v115_v29, %v113_v34  ;;  %v130_v55 = vstv %s346_s8  ;;  %v161_v61 = vstv %s351_s2 }
  0x46   :  { %v123_v48 = vmul.f32 %v122_v35, %v102_v39  ;;  %v138_v49 = vmul.f32 %v137_v36, %v102_v39  ;;  %v154_v50 = vmul.f32 %v153_v38, %v102_v39 }
  0x47   :  { %v117_v47 = vmax.f32 %v116_v40, 0.0 }
  0x48   :  { %v124_v51 = vadd.f32 %v123_v48, %v120_v41  ;;  %v139_v53 = vadd.f32 %v138_v49, %v135_v42  ;;  %v155_v57 = vadd.f32 %v154_v50, %v151_v45 }
  0x49   :  { %v127_v52 = vmul.f32 %v126_v43, %v117_v47  ;;  %v142_v54 = vmul.f32 %v141_v44, %v117_v47  ;;  %v158_v58 = vmul.f32 %v157_v46, %v117_v47 }
  0x4b   :  { %v128_v59 = vadd.f32 %v127_v52, %v124_v51  ;;  %v143_v60 = vadd.f32 %v142_v54, %v139_v53  ;;  %v159_v62 = vadd.f32 %v158_v58, %v155_v57 }
  0x4d   :  { %v131_v63 = vadd.f32 %v130_v55, %v128_v59  ;;  %v146_v0 = vadd.f32 %v145_v56, %v143_v60  ;;  %v162_v1 = vadd.f32 %v161_v61, %v159_v62 }
  0x4f   :  { %132 = vst [vmem:[%s377_s5] sm:$0xff] %v131_v63  ;;  %190 = vst [vmem:[%s377_s5 + $0x8] sm:$0xff] %v146_v0 }
  0x50   :  { %195 = vst [vmem:[%s377_s5 + $0x10] sm:$0xff] %v162_v1 }
  0x51   :  { %169 = vsyncpa [#allocation3], 1 }
  0x52   :  { %170 = vsyncpa [#allocation5], 1 }
  0x53   :  { %171 = vsyncpa [#allocation8], 1 }

</bundles_post_ra>
